<compile_context>
chip_gen: v7x
topology: tpu7x:2x2x1
jax: 0.10.0
libtpu: 0.0.40
codegen_flags: <defaults>
</compile_context>

<pallas_src>
import jax
import jax.numpy as jnp
import numpy as np
from jax import lax
from jax.experimental import pallas as pl
from jax.experimental.pallas import tpu as pltpu


# ----------------------------------------------------------------------------
# Pallas kernel (one batch element per grid step)
# ----------------------------------------------------------------------------
def _fused_block_kernel(x_ref, rhp_ref, ppad_ref, u_ref, w1_ref, b1_ref,
                        w2_ref, b2sc_ref, wsc_ref, hskip_ref, out_ref):
    """relu -> 2x nearest up -> conv1 ; relu -> conv2 + 1x1 shortcut.

    Lane-dense layout: activation slabs are 2-D (rows, W*C).
      x_ref    : (1, H, W*Cin)        raw input slab
      rhp_ref  : (Hu+2, H)            0/1 row-repeat (H upsample) + zero border
      ppad_ref : (Hu+2, Hu)           0/1 row embed with zero border rows
      u_ref    : (W*Cin, Wu*Cin)      0/1 column/channel repeat (W upsample)
      w1_ref   : (3*Wu*Cin,  Wu*Cout) conv1 banded weight (dx taps + W-pad folded)
      b1_ref   : (1, Wu*Cout)
      w2_ref   : (3*Wu*Cout, Wu*Cout) conv2 banded weight
      b2sc_ref : (1, Wu*Cout)         b2 + b_sc, lane-tiled
      wsc_ref  : (W*Cin, Wu*Cout)     W-upsample + 1x1 shortcut conv, folded
      hskip_ref: (1, Hu, Wu*Cout)     output: h_skip_out = c1(up(relu(x)))
      out_ref  : (1, Hu, Wu*Cout)     output: c2(relu(h_skip)) + c_sc(up(x))
    """
    Hu = hskip_ref.shape[1]

    xr = x_ref[0].astype(jnp.float32)            # (H, W*Cin)
    rhp = rhp_ref[...]                           # (Hu+2, H)
    ppad = ppad_ref[...]                         # (Hu+2, Hu)

    # Shortcut path: c_sc(nearest_up(x)).  W-upsample + 1x1 conv are folded
    # into wsc_ref; the H-upsample is the rhp matmul (interior rows).
    sc_pad = jnp.dot(
        rhp, jnp.dot(xr, wsc_ref[...], preferred_element_type=jnp.float32),
        preferred_element_type=jnp.float32)      # (Hu+2, Wu*Cout)
    sc = sc_pad[1:Hu + 1, :]                     # (Hu, Wu*Cout)

    # Main path: ReLU once, then nearest 2x upsample via the two constant
    # matmuls.  rhp's zero border rows give the H-direction zero pad for free.
    xrelu = jnp.maximum(xr, 0.0)
    xup = jnp.dot(
        rhp, jnp.dot(xrelu, u_ref[...], preferred_element_type=jnp.float32),
        preferred_element_type=jnp.float32)      # (Hu+2, Wu*Cin), zero-bordered

    # conv1 as a single im2col matmul: three dy-shifted row slices are
    # lane-concatenated; dx taps + W zero-pad live inside the banded weight.
    p1 = jnp.concatenate([xup[dy:dy + Hu, :] for dy in range(3)], axis=1)
    h = jnp.dot(p1, w1_ref[...], preferred_element_type=jnp.float32) + b1_ref[...]
    hskip_ref[0] = h                             # h_skip_out (stays in VMEM for conv2)

    # conv2 on relu(h) (+ shortcut).  Row zero-pad via the constant embed matmul.
    hp = jnp.dot(ppad, jnp.maximum(h, 0.0),
                 preferred_element_type=jnp.float32)          # (Hu+2, Wu*Cout)
    p2 = jnp.concatenate([hp[dy:dy + Hu, :] for dy in range(3)], axis=1)
    out = jnp.dot(p2, w2_ref[...], preferred_element_type=jnp.float32)
    out_ref[0] = out + b2sc_ref[...] + sc


# ----------------------------------------------------------------------------
# Wrapper: builds the constant structure matrices / folded weights and calls
# the fused kernel.  Only layout plumbing (transpose/reshape) stays in XLA.
# ----------------------------------------------------------------------------
def _repeat_matrix(n_out, n_in, dtype):
    """0/1 matrix R with R[I, i] = 1 iff i == I // 2 (nearest 2x upsample)."""
    return (jnp.arange(n_out)[:, None] // 2 ==
            jnp.arange(n_in)[None, :]).astype(dtype)


def _banded_conv_weight(w, wu):
    """Fold dx taps + W-direction zero pad of a 3x3 'same' conv into a banded
    block matrix.

    w : (3, 3, Ci, Co) HWIO weights.
    Returns (3*wu*Ci, wu*Co) with
      M[dy*wu*Ci + w_in*Ci + c, w_out*Co + co] =
          w[dy, w_in - w_out + 1, c, co]  if 0 <= w_in - w_out + 1 <= 2 else 0.
    """
    ci, co = w.shape[2], w.shape[3]
    w_in = jnp.arange(wu)
    w_out = jnp.arange(wu)
    dx = w_in[:, None] - w_out[None, :] + 1                   # (wu, wu)
    valid = ((dx >= 0) & (dx <= 2)).astype(w.dtype)
    dxc = jnp.clip(dx, 0, 2)
    g = w[:, dxc, :, :] * valid[None, :, :, None, None]       # (3, wu, wu, ci, co)
    g = jnp.transpose(g, (0, 1, 3, 2, 4))                     # (3, wu, ci, wu, co)
    return g.reshape(3 * wu * ci, wu * co)


def convolutional_block_forward(x_nchw, params):
    """Forward of ConvolutionalBlock (norm=None, short_cut=True, no skip_in).

    x_nchw: (N, Cin, H, W) float32
    Returns (h_skip_out, final_out), both NCHW, channels=Cout, spatial=2x.
    """
    w1, b1 = params["w1"], params["b1"]          # (3,3,Cin,Cout), (Cout,)
    w2, b2 = params["w2"], params["b2"]          # (3,3,Cout,Cout), (Cout,)
    wsc, bsc = params["wsc"], params["bsc"]      # (Cin,Cout), (Cout,)

    f32 = jnp.float32
    x = jnp.transpose(x_nchw, (0, 2, 3, 1)).astype(f32)       # NHWC
    N, H, W, Cin = x.shape
    Cout = w1.shape[3]
    Hu, Wu = 2 * H, 2 * W

    # Lane-dense input slab: (N, H, W*Cin).
    x_slab = x.reshape(N, H, W * Cin)

    # Constant structure matrices and folded weights (tiny, built by XLA).
    rh = _repeat_matrix(Hu, H, f32)                           # (Hu, H)
    rw = _repeat_matrix(Wu, W, f32)                           # (Wu, W)
    rhp = jnp.pad(rh, ((1, 1), (0, 0)))                       # (Hu+2, H)
    ppad = jnp.pad(jnp.eye(Hu, dtype=f32), ((1, 1), (0, 0)))  # (Hu+2, Hu)
    u = jnp.kron(rw.T, jnp.eye(Cin, dtype=f32))               # (W*Cin, Wu*Cin)
    w1_bd = _banded_conv_weight(w1.astype(f32), Wu)           # (3*Wu*Cin,  Wu*Cout)
    w2_bd = _banded_conv_weight(w2.astype(f32), Wu)           # (3*Wu*Cout, Wu*Cout)
    wsc_fold = jnp.kron(rw.T, wsc.astype(f32))                # (W*Cin, Wu*Cout)
    b1_lane = jnp.tile(b1.astype(f32), Wu)[None, :]           # (1, Wu*Cout)
    b2sc_lane = jnp.tile((b2 + bsc).astype(f32), Wu)[None, :]  # (1, Wu*Cout)

    grid_spec = pltpu.PrefetchScalarGridSpec(
        num_scalar_prefetch=0,
        grid=(N,),
        in_specs=[
            pl.BlockSpec((1, H, W * Cin), lambda n: (n, 0, 0)),
            pl.BlockSpec((Hu + 2, H), lambda n: (0, 0)),
            pl.BlockSpec((Hu + 2, Hu), lambda n: (0, 0)),
            pl.BlockSpec((W * Cin, Wu * Cin), lambda n: (0, 0)),
            pl.BlockSpec((3 * Wu * Cin, Wu * Cout), lambda n: (0, 0)),
            pl.BlockSpec((1, Wu * Cout), lambda n: (0, 0)),
            pl.BlockSpec((3 * Wu * Cout, Wu * Cout), lambda n: (0, 0)),
            pl.BlockSpec((1, Wu * Cout), lambda n: (0, 0)),
            pl.BlockSpec((W * Cin, Wu * Cout), lambda n: (0, 0)),
        ],
        out_specs=[
            pl.BlockSpec((1, Hu, Wu * Cout), lambda n: (n, 0, 0)),
            pl.BlockSpec((1, Hu, Wu * Cout), lambda n: (n, 0, 0)),
        ],
    )

    h_skip_slab, out_slab = pl.pallas_call(
        _fused_block_kernel,
        out_shape=(jax.ShapeDtypeStruct((N, Hu, Wu * Cout), f32),
                   jax.ShapeDtypeStruct((N, Hu, Wu * Cout), f32)),
        grid_spec=grid_spec,
        compiler_params=pltpu.CompilerParams(
            dimension_semantics=("parallel",)),
    )(x_slab, rhp, ppad, u, w1_bd, b1_lane, w2_bd, b2sc_lane, wsc_fold)

    # Back to NCHW to match the PyTorch convention.
    h_skip = jnp.transpose(h_skip_slab.reshape(N, Hu, Wu, Cout), (0, 3, 1, 2))
    final = jnp.transpose(out_slab.reshape(N, Hu, Wu, Cout), (0, 3, 1, 2))
    return h_skip, final


# ----------------------------------------------------------------------------
# Pure-JAX reference for validation
# ----------------------------------------------------------------------------
def _ref_forward(x_nchw, params):
    w1, b1 = params["w1"], params["b1"]
    w2, b2 = params["w2"], params["b2"]
    wsc, bsc = params["wsc"], params["bsc"]
    dn = ("NHWC", "HWIO", "NHWC")

    x = jnp.transpose(x_nchw, (0, 2, 3, 1)).astype(jnp.float32)
    h = jax.nn.relu(x)
    h = jnp.repeat(jnp.repeat(h, 2, axis=1), 2, axis=2)
    h = lax.conv_general_dilated(h, w1, (1, 1), "SAME", dimension_numbers=dn) + b1
    h_skip = h
    h = jax.nn.relu(h)
    out = lax.conv_general_dilated(h, w2, (1, 1), "SAME", dimension_numbers=dn) + b2
    x_up = jnp.repeat(jnp.repeat(x, 2, axis=1), 2, axis=2)
    out = out + (lax.conv_general_dilated(
        x_up, wsc.reshape(1, 1, *wsc.shape), (1, 1), "SAME",
        dimension_numbers=dn) + bsc)
    return (jnp.transpose(h_skip, (0, 3, 1, 2)),
            jnp.transpose(out, (0, 3, 1, 2)))


# ----------------------------------------------------------------------------
if __name__ == "__main__":
    key = jax.random.PRNGKey(0)
    N, Cin, Cout, H, W = 2, 4, 8, 8, 8     # -> Hu=Wu=16, Wu*Cout = 128 lanes
    k = jax.random.split(key, 8)

    x = jax.random.normal(k[0], (N, Cin, H, W), dtype=jnp.float32)
    params = {
        "w1": 0.1 * jax.random.normal(k[1], (3, 3, Cin, Cout), jnp.float32),
        "b1": 0.1 * jax.random.normal(k[2], (Cout,), jnp.float32),
        "w2": 0.1 * jax.random.normal(k[3], (3, 3, Cout, Cout), jnp.float32),
        "b2": 0.1 * jax.random.normal(k[4], (Cout,), jnp.float32),
        "wsc": 0.1 * jax.random.normal(k[5], (Cin, Cout), jnp.float32),
        "bsc": 0.1 * jax.random.normal(k[6], (Cout,), jnp.float32),
    }

    fwd = jax.jit(convolutional_block_forward)
    h_skip_out, final_out = fwd(x, params)
    jax.block_until_ready((h_skip_out, final_out))

    h_ref, f_ref = _ref_forward(x, params)
    np.testing.assert_allclose(np.asarray(h_skip_out), np.asarray(h_ref),
                               rtol=1e-4, atol=1e-4)
    np.testing.assert_allclose(np.asarray(final_out), np.asarray(f_ref),
                               rtol=1e-4, atol=1e-4)

    print("KERNEL_OK")
</pallas_src>

<mosaic_0001>
module attributes {stable_mosaic.version = 11 : i64} {
  func.func @_fused_block_kernel(%arg0: i32, %arg1: memref<1x8x32xf32, #tpu.memory_space<vmem>>, %arg2: memref<18x8xf32, #tpu.memory_space<vmem>>, %arg3: memref<18x16xf32, #tpu.memory_space<vmem>>, %arg4: memref<32x64xf32, #tpu.memory_space<vmem>>, %arg5: memref<192x128xf32, #tpu.memory_space<vmem>>, %arg6: memref<1x128xf32, #tpu.memory_space<vmem>>, %arg7: memref<384x128xf32, #tpu.memory_space<vmem>>, %arg8: memref<1x128xf32, #tpu.memory_space<vmem>>, %arg9: memref<32x128xf32, #tpu.memory_space<vmem>>, %arg10: memref<1x16x128xf32, #tpu.memory_space<vmem>>, %arg11: memref<1x16x128xf32, #tpu.memory_space<vmem>>) attributes {dimension_semantics = [#tpu.dimension_semantics<parallel>], iteration_bounds = array<i64: 2>, scalar_prefetch = 0 : i64, scratch_operands = 0 : i64, tpu.core_type = #tpu.core_type<tc>, window_params = [{transform_indices = @transform_0, window_bounds = array<i64: 1, 8, 32>}, {pipeline_mode = #tpu.pipeline_mode<synchronous>, transform_indices = @transform_1, window_bounds = array<i64: 18, 8>}, {pipeline_mode = #tpu.pipeline_mode<synchronous>, transform_indices = @transform_2, window_bounds = array<i64: 18, 16>}, {pipeline_mode = #tpu.pipeline_mode<synchronous>, transform_indices = @transform_3, window_bounds = array<i64: 32, 64>}, {pipeline_mode = #tpu.pipeline_mode<synchronous>, transform_indices = @transform_4, window_bounds = array<i64: 192, 128>}, {pipeline_mode = #tpu.pipeline_mode<synchronous>, transform_indices = @transform_5, window_bounds = array<i64: 1, 128>}, {pipeline_mode = #tpu.pipeline_mode<synchronous>, transform_indices = @transform_6, window_bounds = array<i64: 384, 128>}, {pipeline_mode = #tpu.pipeline_mode<synchronous>, transform_indices = @transform_7, window_bounds = array<i64: 1, 128>}, {pipeline_mode = #tpu.pipeline_mode<synchronous>, transform_indices = @transform_8, window_bounds = array<i64: 32, 128>}, {transform_indices = @transform_9, window_bounds = array<i64: 1, 16, 128>}, {transform_indices = @transform_10, window_bounds = array<i64: 1, 16, 128>}]} {
    %c0 = arith.constant 0 : index
    %c0_0 = arith.constant 0 : index
    %c0_1 = arith.constant 0 : index
    %0 = vector.load %arg1[%c0, %c0_0, %c0_1] : memref<1x8x32xf32, #tpu.memory_space<vmem>>, vector<1x8x32xf32>
    %1 = vector.shape_cast %0 : vector<1x8x32xf32> to vector<8x32xf32>
    %c0_2 = arith.constant 0 : index
    %c0_3 = arith.constant 0 : index
    %2 = vector.load %arg2[%c0_2, %c0_3] : memref<18x8xf32, #tpu.memory_space<vmem>>, vector<18x8xf32>
    %c0_4 = arith.constant 0 : index
    %c0_5 = arith.constant 0 : index
    %3 = vector.load %arg3[%c0_4, %c0_5] : memref<18x16xf32, #tpu.memory_space<vmem>>, vector<18x16xf32>
    %c0_6 = arith.constant 0 : index
    %c0_7 = arith.constant 0 : index
    %4 = vector.load %arg9[%c0_6, %c0_7] : memref<32x128xf32, #tpu.memory_space<vmem>>, vector<32x128xf32>
    %cst = arith.constant dense<0.000000e+00> : vector<8x128xf32>
    %5 = tpu.matmul %1, %4, %cst {dimension_numbers = #tpu.dot_dimension_numbers<[1], [0], [0], [1], [0, 0, 1, 1], [], []>} : vector<8x32xf32>, vector<32x128xf32>, vector<8x128xf32> -> vector<8x128xf32>
    %cst_8 = arith.constant dense<0.000000e+00> : vector<18x128xf32>
    %6 = tpu.matmul %2, %5, %cst_8 {dimension_numbers = #tpu.dot_dimension_numbers<[1], [0], [0], [1], [0, 0, 1, 1], [], []>} : vector<18x8xf32>, vector<8x128xf32>, vector<18x128xf32> -> vector<18x128xf32>
    %7 = vector.extract_strided_slice %6 {offsets = [1, 0], sizes = [16, 128], strides = [1, 1]} : vector<18x128xf32> to vector<16x128xf32>
    %cst_9 = arith.constant 0.000000e+00 : f32
    %8 = vector.broadcast %cst_9 : f32 to vector<8x32xf32>
    %9 = arith.maximumf %1, %8 : vector<8x32xf32>
    %c0_10 = arith.constant 0 : index
    %c0_11 = arith.constant 0 : index
    %10 = vector.load %arg4[%c0_10, %c0_11] : memref<32x64xf32, #tpu.memory_space<vmem>>, vector<32x64xf32>
    %cst_12 = arith.constant dense<0.000000e+00> : vector<8x64xf32>
    %11 = tpu.matmul %9, %10, %cst_12 {dimension_numbers = #tpu.dot_dimension_numbers<[1], [0], [0], [1], [0, 0, 1, 1], [], []>} : vector<8x32xf32>, vector<32x64xf32>, vector<8x64xf32> -> vector<8x64xf32>
    %cst_13 = arith.constant dense<0.000000e+00> : vector<18x64xf32>
    %12 = tpu.matmul %2, %11, %cst_13 {dimension_numbers = #tpu.dot_dimension_numbers<[1], [0], [0], [1], [0, 0, 1, 1], [], []>} : vector<18x8xf32>, vector<8x64xf32>, vector<18x64xf32> -> vector<18x64xf32>
    %13 = vector.extract_strided_slice %12 {offsets = [0, 0], sizes = [16, 64], strides = [1, 1]} : vector<18x64xf32> to vector<16x64xf32>
    %14 = vector.extract_strided_slice %12 {offsets = [1, 0], sizes = [16, 64], strides = [1, 1]} : vector<18x64xf32> to vector<16x64xf32>
    %15 = vector.extract_strided_slice %12 {offsets = [2, 0], sizes = [16, 64], strides = [1, 1]} : vector<18x64xf32> to vector<16x64xf32>
    %16 = tpu.concatenate %13, %14, %15 in 1 : vector<16x64xf32>, vector<16x64xf32>, vector<16x64xf32> -> vector<16x192xf32>
    %c0_14 = arith.constant 0 : index
    %c0_15 = arith.constant 0 : index
    %17 = vector.load %arg5[%c0_14, %c0_15] : memref<192x128xf32, #tpu.memory_space<vmem>>, vector<192x128xf32>
    %cst_16 = arith.constant dense<0.000000e+00> : vector<16x128xf32>
    %18 = tpu.matmul %16, %17, %cst_16 {dimension_numbers = #tpu.dot_dimension_numbers<[1], [0], [0], [1], [0, 0, 1, 1], [], []>} : vector<16x192xf32>, vector<192x128xf32>, vector<16x128xf32> -> vector<16x128xf32>
    %c0_17 = arith.constant 0 : index
    %c0_18 = arith.constant 0 : index
    %19 = vector.load %arg6[%c0_17, %c0_18] : memref<1x128xf32, #tpu.memory_space<vmem>>, vector<1x128xf32>
    %20 = vector.broadcast %19 : vector<1x128xf32> to vector<16x128xf32>
    %21 = arith.addf %18, %20 : vector<16x128xf32>
    %c0_19 = arith.constant 0 : index
    %c0_20 = arith.constant 0 : index
    %c0_21 = arith.constant 0 : index
    %22 = vector.load %arg10[%c0_19, %c0_20, %c0_21] : memref<1x16x128xf32, #tpu.memory_space<vmem>>, vector<1x16x128xf32>
    %23 = vector.shape_cast %22 : vector<1x16x128xf32> to vector<16x128xf32>
    %24 = vector.shape_cast %21 : vector<16x128xf32> to vector<1x16x128xf32>
    tpu.vector_store %arg10[%c0_19, %c0_20, %c0_21], %24 {strides = array<i32>} : memref<1x16x128xf32, #tpu.memory_space<vmem>>, vector<1x16x128xf32>,
    %cst_22 = arith.constant 0.000000e+00 : f32
    %25 = vector.broadcast %cst_22 : f32 to vector<16x128xf32>
    %26 = arith.maximumf %21, %25 : vector<16x128xf32>
    %cst_23 = arith.constant dense<0.000000e+00> : vector<18x128xf32>
    %27 = tpu.matmul %3, %26, %cst_23 {dimension_numbers = #tpu.dot_dimension_numbers<[1], [0], [0], [1], [0, 0, 1, 1], [], []>} : vector<18x16xf32>, vector<16x128xf32>, vector<18x128xf32> -> vector<18x128xf32>
    %28 = vector.extract_strided_slice %27 {offsets = [0, 0], sizes = [16, 128], strides = [1, 1]} : vector<18x128xf32> to vector<16x128xf32>
    %29 = vector.extract_strided_slice %27 {offsets = [1, 0], sizes = [16, 128], strides = [1, 1]} : vector<18x128xf32> to vector<16x128xf32>
    %30 = vector.extract_strided_slice %27 {offsets = [2, 0], sizes = [16, 128], strides = [1, 1]} : vector<18x128xf32> to vector<16x128xf32>
    %31 = tpu.concatenate %28, %29, %30 in 1 : vector<16x128xf32>, vector<16x128xf32>, vector<16x128xf32> -> vector<16x384xf32>
    %c0_24 = arith.constant 0 : index
    %c0_25 = arith.constant 0 : index
    %32 = vector.load %arg7[%c0_24, %c0_25] : memref<384x128xf32, #tpu.memory_space<vmem>>, vector<384x128xf32>
    %cst_26 = arith.constant dense<0.000000e+00> : vector<16x128xf32>
    %33 = tpu.matmul %31, %32, %cst_26 {dimension_numbers = #tpu.dot_dimension_numbers<[1], [0], [0], [1], [0, 0, 1, 1], [], []>} : vector<16x384xf32>, vector<384x128xf32>, vector<16x128xf32> -> vector<16x128xf32>
    %c0_27 = arith.constant 0 : index
    %c0_28 = arith.constant 0 : index
    %34 = vector.load %arg8[%c0_27, %c0_28] : memref<1x128xf32, #tpu.memory_space<vmem>>, vector<1x128xf32>
    %35 = vector.broadcast %34 : vector<1x128xf32> to vector<16x128xf32>
    %36 = arith.addf %33, %35 : vector<16x128xf32>
    %37 = arith.addf %36, %7 : vector<16x128xf32>
    %c0_29 = arith.constant 0 : index
    %c0_30 = arith.constant 0 : index
    %c0_31 = arith.constant 0 : index
    %38 = vector.load %arg11[%c0_29, %c0_30, %c0_31] : memref<1x16x128xf32, #tpu.memory_space<vmem>>, vector<1x16x128xf32>
    %39 = vector.shape_cast %38 : vector<1x16x128xf32> to vector<16x128xf32>
    %40 = vector.shape_cast %37 : vector<16x128xf32> to vector<1x16x128xf32>
    tpu.vector_store %arg11[%c0_29, %c0_30, %c0_31], %40 {strides = array<i32>} : memref<1x16x128xf32, #tpu.memory_space<vmem>>, vector<1x16x128xf32>,
    return
  }
  func.func @transform_0(%arg0: i32) -> (i32, i32, i32) {
    %c0_i32 = arith.constant 0 : i32
    %c0_i32_0 = arith.constant 0 : i32
    %c0_i32_1 = arith.constant 0 : i32
    return %arg0, %c0_i32, %c0_i32_0 : i32, i32, i32
  }
  func.func @transform_1(%arg0: i32) -> (i32, i32) {
    %c0_i32 = arith.constant 0 : i32
    %c0_i32_0 = arith.constant 0 : i32
    %c0_i32_1 = arith.constant 0 : i32
    return %c0_i32, %c0_i32_0 : i32, i32
  }
  func.func @transform_2(%arg0: i32) -> (i32, i32) {
    %c0_i32 = arith.constant 0 : i32
    %c0_i32_0 = arith.constant 0 : i32
    %c0_i32_1 = arith.constant 0 : i32
    return %c0_i32, %c0_i32_0 : i32, i32
  }
  func.func @transform_3(%arg0: i32) -> (i32, i32) {
    %c0_i32 = arith.constant 0 : i32
    %c0_i32_0 = arith.constant 0 : i32
    %c0_i32_1 = arith.constant 0 : i32
    return %c0_i32, %c0_i32_0 : i32, i32
  }
  func.func @transform_4(%arg0: i32) -> (i32, i32) {
    %c0_i32 = arith.constant 0 : i32
    %c0_i32_0 = arith.constant 0 : i32
    %c0_i32_1 = arith.constant 0 : i32
    return %c0_i32, %c0_i32_0 : i32, i32
  }
  func.func @transform_5(%arg0: i32) -> (i32, i32) {
    %c0_i32 = arith.constant 0 : i32
    %c0_i32_0 = arith.constant 0 : i32
    %c0_i32_1 = arith.constant 0 : i32
    return %c0_i32, %c0_i32_0 : i32, i32
  }
  func.func @transform_6(%arg0: i32) -> (i32, i32) {
    %c0_i32 = arith.constant 0 : i32
    %c0_i32_0 = arith.constant 0 : i32
    %c0_i32_1 = arith.constant 0 : i32
    return %c0_i32, %c0_i32_0 : i32, i32
  }
  func.func @transform_7(%arg0: i32) -> (i32, i32) {
    %c0_i32 = arith.constant 0 : i32
    %c0_i32_0 = arith.constant 0 : i32
    %c0_i32_1 = arith.constant 0 : i32
    return %c0_i32, %c0_i32_0 : i32, i32
  }
  func.func @transform_8(%arg0: i32) -> (i32, i32) {
    %c0_i32 = arith.constant 0 : i32
    %c0_i32_0 = arith.constant 0 : i32
    %c0_i32_1 = arith.constant 0 : i32
    return %c0_i32, %c0_i32_0 : i32, i32
  }
  func.func @transform_9(%arg0: i32) -> (i32, i32, i32) {
    %c0_i32 = arith.constant 0 : i32
    %c0_i32_0 = arith.constant 0 : i32
    %c0_i32_1 = arith.constant 0 : i32
    return %arg0, %c0_i32, %c0_i32_0 : i32, i32, i32
  }
  func.func @transform_10(%arg0: i32) -> (i32, i32, i32) {
    %c0_i32 = arith.constant 0 : i32
    %c0_i32_0 = arith.constant 0 : i32
    %c0_i32_1 = arith.constant 0 : i32
    return %arg0, %c0_i32, %c0_i32_0 : i32, i32, i32
  }
}

</mosaic_0001>

<bundles_post_ra>
// kernel: tile.18
= control target key start
LH: loop header
LB: loop body
LE: loop exit
PB: predicated region body
PF: predicated region fallthrough
CT: control target
= control target key end

     0   :  { %s28_s0 = inlined_call_operand.vmem [shape: f32[8], index: 0, kind: input, shape index: {}]   ;;  %s29_s1 = inlined_call_operand.vmem [shape: f32[16,8], index: 1, kind: output, shape index: {}]  }
   0x1   :  { %v4_v0 = vld [vmem:[%s28_s0] ss:$0 sm:$0xff] }
   0x2   :  { %5 = vst [vmem:[%s29_s1] sm:$0xff] %v4_v0  ;;  %8 = vst [vmem:[%s29_s1 + $0x8] sm:$0xff] %v4_v0 }

// kernel: tile.19
= control target key start
LH: loop header
LB: loop body
LE: loop exit
PB: predicated region body
PF: predicated region fallthrough
CT: control target
= control target key end

     0   :  { %s131_s10 = smov 120   ;;  %s132_s11 = smov 104   ;;  %vm3_vm0 = vcmask 64512   ;;  %vm9_vm1 = vcmask 1048512   ;;  %vm15_vm2 = vcmask 982912   ;;  %vm21_vm3 = vcmask 917312   ;;  %s207_s0 = inlined_call_operand.vmem [shape: f32[16,8], index: 0, kind: input, shape index: {}]   ;;  %s208_s1 = inlined_call_operand.vmem [shape: f32[1,128], index: 1, kind: output, shape index: {}]  }
   0x1   :  { %v101_v0 = vld [vmem:[%s207_s0 + $0xf] sm:$0x1]   ;;  %v103_v1 = vld [vmem:[%s207_s0 + $0xd] sm:$0x1]   ;;  %v102_v2 = vld [vmem:[%s207_s0 + $0xe] sm:$0x1]  }
   0x2   :  { %7 = vrot.lane.b32.xlu0 %v101_v0, %s131_s10  ;;  %19 = vrot.lane.b32.xlu1 %v103_v1, %s132_s11  ;;  %v104_v3 = vld [vmem:[%s207_s0 + $0xc] sm:$0x1]   ;;  %s133_s16 = smov 112   ;;  %s134_s17 = smov 96   ;;  %v105_v4 = vld [vmem:[%s207_s0 + $0xb] sm:$0x1]  }
   0x3   :  { %v106_v5 = vld [vmem:[%s207_s0 + $0xa] sm:$0x1]   ;;  %v2_v6 = vld [vmem:[%s207_s0] sm:$0x1]   ;;  %s135_s24 = smov 88   ;;  %s136_s25 = smov 80  }
   0x4   :  { %4 = vst.msk [vmem:[#allocation0] sm:$0x1] %vm3_vm0, %v2_v6   ;;  %v107_v7 = vld [vmem:[%s207_s0 + $0x9] sm:$0x1]   ;;  %v108_v8 = vld [vmem:[%s207_s0 + $0x8] sm:$0x1]  }
   0x5   :  { %s137_s30 = smov 72   ;;  %s138_s2 = smov 64   ;;  %v109_v9 = vld [vmem:[%s207_s0 + $0x7] sm:$0x1]   ;;  %v110_v10 = vld [vmem:[%s207_s0 + $0x6] sm:$0x1]  }
   0x6   :  { %13 = vrot.lane.b32.xlu0 %v102_v2, %s133_s16  ;;  %25 = vrot.lane.b32.xlu1 %v104_v3, %s134_s17  ;;  %s139_s7 = smov 56   ;;  %s140_s8 = smov 48   ;;  %v111_v11 = vld [vmem:[%s207_s0 + $0x5] sm:$0x1]   ;;  %v112_v12 = vld [vmem:[%s207_s0 + $0x4] sm:$0x1]  }
   0x7   :  { %s141_s13 = smov 40   ;;  %s142_s14 = smov 32   ;;  %v113_v13 = vld [vmem:[%s207_s0 + $0x3] sm:$0x1]   ;;  %v114_v14 = vld [vmem:[%s207_s0 + $0x2] sm:$0x1]  }
   0x8   :  { %s143_s19 = smov 24   ;;  %s144_s20 = smov 16   ;;  %v115_v15 = vld [vmem:[%s207_s0 + $0x1] sm:$0x1]   ;;  %vm27_vm4 = vcmask 851712   ;;  %vm33_vm5 = vcmask 786112  }
   0x9   :  { %s145_s0 = smov 8   ;;  %vm39_vm6 = vcmask 720512   ;;  %vm45_vm7 = vcmask 654912   ;;  %vm51_vm8 = vcmask 589312   ;;  %vm57_vm9 = vcmask 523712  }
   0xa   :  { %31 = vrot.lane.b32.xlu0 %v105_v4, %s135_s24  ;;  %37 = vrot.lane.b32.xlu1 %v106_v5, %s136_s25  ;;  %vm63_vm10 = vcmask 458112   ;;  %vm69_vm11 = vcmask 392512   ;;  %vm75_vm12 = vcmask 326912   ;;  %vm81_vm13 = vcmask 261312  }
   0xb   :  { %vm87_vm14 = vcmask 195712   ;;  %vm93_vm15 = vcmask 130112  }
   0xe   :  { %43 = vrot.lane.b32.xlu0 %v107_v7, %s137_s30  ;;  %49 = vrot.lane.b32.xlu1 %v108_v8, %s138_s2 }
  0x12   :  { %55 = vrot.lane.b32.xlu0 %v109_v9, %s139_s7  ;;  %61 = vrot.lane.b32.xlu1 %v110_v10, %s140_s8 }
  0x16   :  { %67 = vrot.lane.b32.xlu0 %v111_v11, %s141_s13  ;;  %73 = vrot.lane.b32.xlu1 %v112_v12, %s142_s14 }
  0x1a   :  { %79 = vrot.lane.b32.xlu0 %v113_v13, %s143_s19  ;;  %85 = vrot.lane.b32.xlu1 %v114_v14, %s144_s20 }
  0x1e   :  { %91 = vrot.lane.b32.xlu0 %v115_v15, %s145_s0 }
  0x74   :  { %v8_v16 = vpop.permute.xlu0 %7   ;;  %v20_v17 = vpop.permute.xlu1 %19  }
  0x75   :  { %10 = vst.msk [vmem:[#allocation0] sm:$0x1] %vm9_vm1, %v8_v16  }
  0x78   :  { %v14_v18 = vpop.permute.xlu0 %13   ;;  %v26_v19 = vpop.permute.xlu1 %25  }
  0x79   :  { %16 = vst.msk [vmem:[#allocation0] sm:$0x1] %vm15_vm2, %v14_v18  }
  0x7a   :  { %22 = vst.msk [vmem:[#allocation0] sm:$0x1] %vm21_vm3, %v20_v17  }
  0x7b   :  { %28 = vst.msk [vmem:[#allocation0] sm:$0x1] %vm27_vm4, %v26_v19  }
  0x7c   :  { %v32_v20 = vpop.permute.xlu0 %31   ;;  %v38_v21 = vpop.permute.xlu1 %37  }
  0x7d   :  { %34 = vst.msk [vmem:[#allocation0] sm:$0x1] %vm33_vm5, %v32_v20  }
  0x7e   :  { %40 = vst.msk [vmem:[#allocation0] sm:$0x1] %vm39_vm6, %v38_v21  }
  0x80   :  { %v44_v22 = vpop.permute.xlu0 %43   ;;  %v50_v23 = vpop.permute.xlu1 %49  }
  0x81   :  { %46 = vst.msk [vmem:[#allocation0] sm:$0x1] %vm45_vm7, %v44_v22  }
  0x82   :  { %52 = vst.msk [vmem:[#allocation0] sm:$0x1] %vm51_vm8, %v50_v23  }
  0x84   :  { %v56_v24 = vpop.permute.xlu0 %55   ;;  %v62_v25 = vpop.permute.xlu1 %61  }
  0x85   :  { %58 = vst.msk [vmem:[#allocation0] sm:$0x1] %vm57_vm9, %v56_v24  }
  0x86   :  { %64 = vst.msk [vmem:[#allocation0] sm:$0x1] %vm63_vm10, %v62_v25  }
  0x88   :  { %v68_v26 = vpop.permute.xlu0 %67   ;;  %v74_v27 = vpop.permute.xlu1 %73  }
  0x89   :  { %70 = vst.msk [vmem:[#allocation0] sm:$0x1] %vm69_vm11, %v68_v26  }
  0x8a   :  { %76 = vst.msk [vmem:[#allocation0] sm:$0x1] %vm75_vm12, %v74_v27  }
  0x8c   :  { %v80_v28 = vpop.permute.xlu0 %79   ;;  %v86_v29 = vpop.permute.xlu1 %85  }
  0x8d   :  { %82 = vst.msk [vmem:[#allocation0] sm:$0x1] %vm81_vm13, %v80_v28  }
  0x8e   :  { %88 = vst.msk [vmem:[#allocation0] sm:$0x1] %vm87_vm14, %v86_v29  }
  0x90   :  { %v92_v30 = vpop.permute.xlu0 %91  }
  0x91   :  { %94 = vst.msk [vmem:[#allocation0] sm:$0x1] %vm93_vm15, %v92_v30  }
  0x98   :  { %v98_v31 = vld [vmem:[#allocation0] sm:$0x1] }
  0x99   :  { %100 = vst [vmem:[%s208_s1] sm:$0x1] %v98_v31 }

// kernel: convolutional_block_forward.1
= control target key start
LH: loop header
LB: loop body
LE: loop exit
PB: predicated region body
PF: predicated region fallthrough
CT: control target
= control target key end

     0   :  { %s1649_s13 = smov 0   ;;  %s2011_s0 = inlined_call_operand.vmem [shape: f32[2,8,32], index: 0, kind: input, shape index: {}]   ;;  %s2012_s1 = inlined_call_operand.vmem [shape: f32[18,8], index: 1, kind: input, shape index: {}]   ;;  %s2013_s2 = inlined_call_operand.vmem [shape: f32[18,16], index: 2, kind: input, shape index: {}]   ;;  %s2014_s3 = inlined_call_operand.vmem [shape: f32[32,64], index: 3, kind: input, shape index: {}]   ;;  %s2015_s4 = inlined_call_operand.vmem [shape: f32[192,128], index: 4, kind: input, shape index: {}]   ;;  %s2016_s5 = inlined_call_operand.vmem [shape: f32[1,128], index: 5, kind: input, shape index: {}]   ;;  %s2017_s6 = inlined_call_operand.vmem [shape: f32[384,128], index: 6, kind: input, shape index: {}]   ;;  %s2018_s7 = inlined_call_operand.vmem [shape: f32[1,128], index: 7, kind: input, shape index: {}]   ;;  %s2019_s8 = inlined_call_operand.vmem [shape: f32[32,128], index: 8, kind: input, shape index: {}]   ;;  %s2020_s9 = inlined_call_operand.vmem [shape: f32[2,16,128], index: 9, kind: output, shape index: {0}]   ;;  %s2021_s10 = inlined_call_operand.vmem [shape: f32[2,16,128], index: 10, kind: output, shape index: {1}]  }
   0x1 LB: > { %s1255_s14 = sadd.s32 4294967295, %s1588_s13   ;;  %p1259_p0 = scmp.ge.s32.totalorder %s1588_s13, 1  ;;  %s1588_s13 = sphi %s1649_s13, %s21_s13  }
   0x2   : > { %p314_p1 = scmp.lt.s32.totalorder %s1588_s13, 3 }
   0x4   : > { %p315_p2 = pnand %p1259_p0, %p314_p1 }
   0x5   : > { %v377_v0 = vld [vmem:[%s2019_s8] sm:$0xff] (!%p315_p2)  ;;  %v378_v1 = vld [vmem:[%s2019_s8 + $0x8] sm:$0xff] (!%p315_p2)  ;;  %v1590_v3 = vmov (!%p315_p2), 0.0|0.0   ;;  %v379_v6 = vld [vmem:[%s2019_s8 + $0x10] sm:$0xff] (!%p315_p2)  ;;  %p356_p3 = scmp.lt.s32.totalorder (!%p315_p2), %s1255_s14, 1  ;;  %vm1591_vm0 = vmmov (!%p315_p2), 0  }
   0x6   : > { %318 = sbr.rel (%p315_p2) target bundleno = 1272 (0x4f8), region = 56  ;;  %v546_v2 = vld [vmem:[%s2014_s3] sm:$0xff] (!%p315_p2)  ;;  %1455 = vmatprep.subr.bf16.mxu0 (!%p315_p2), %v1590_v3  ;;  %v1456_v4 = vpack.c.bf16 (!%p315_p2), %v378_v1, %v377_v0  ;;  %1461 = vmatprep.subr.bf16.mxu1 (!%p315_p2), %v1590_v3  ;;  %v547_v5 = vld [vmem:[%s2014_s3 + $0x8] sm:$0xff] (!%p315_p2)  ;;  %v380_v7 = vld [vmem:[%s2019_s8 + $0x18] sm:$0xff] (!%p315_p2)  ;;  %v1592_v9 = vmov (!%p315_p2), 0.0   ;;  %vm381_vm1 = vcmask (!%p315_p2), 261120  }
   0x7   : > { %v1462_v8 = vpack.c.bf16 (!%p315_p2), %v547_v5, %v546_v2  ;;  %1371 = vmatprep.mubr.msk.f32.mxu0 (!%p315_p2), %vm1591_vm0, %v1592_v9  ;;  %v548_v10 = vld [vmem:[%s2014_s3 + $0x10] sm:$0xff] (!%p315_p2)  ;;  %v549_v11 = vld [vmem:[%s2014_s3 + $0x18] sm:$0xff] (!%p315_p2)  ;;  %1393 = vmatprep.mubr.msk.f32.mxu1 (!%p315_p2), %vm1591_vm0, %v1592_v9  ;;  %v1459_v12 = vpack.c.bf16 (!%p315_p2), %v380_v7, %v379_v6  ;;  %v371_v16 = vld [vmem:[%s2012_s1] sm:$0xff] (!%p315_p2)  ;;  %vm455_vm2 = vcmask (!%p315_p2), 64512   ;;  %vm706_vm3 = vcmask (!%p315_p2), 1046528   ;;  %s1593_s17 = smov (!%p315_p2), 64  }
   0x8   : > { %1457 = vmatpush3.bf16.msra.mxu0 (!%p315_p2), %v1456_v4  ;;  %v1465_v13 = vpack.c.bf16 (!%p315_p2), %v549_v11, %v548_v10  ;;  %v372_v21 = vld [vmem:[%s2012_s1 + $0x8] sm:$0xff] (!%p315_p2)  ;;  %v373_v22 = vld [vmem:[%s2012_s1 + $0x10] sm:$0x3] (!%p315_p2)  ;;  %v727_v23 = vld [vmem:[%s2015_s4] sm:$0xff] (!%p315_p2)  ;;  %vm718_vm4 = vcmask (!%p315_p2), 1045504   ;;  %vm724_vm5 = vcmask (!%p315_p2), 523264  }
   0x9   : > { %1458 = vmatprep.subr.bf16.mxu0 (!%p315_p2), %v1590_v3  ;;  %1463 = vmatpush3.bf16.msra.mxu1 (!%p315_p2), %v1462_v8  ;;  %v728_v24 = vld [vmem:[%s2015_s4 + $0x8] sm:$0xff] (!%p315_p2)  ;;  %v729_v25 = vld [vmem:[%s2015_s4 + $0x10] sm:$0xff] (!%p315_p2)  ;;  %v730_v27 = vld [vmem:[%s2015_s4 + $0x18] sm:$0xff] (!%p315_p2)  ;;  %vm841_vm6 = vcmask (!%p315_p2), 130048  }
   0xa   : > { %1464 = vmatprep.subr.bf16.mxu1 (!%p315_p2), %v1590_v3  ;;  %v1468_v26 = vpack.c.bf16 (!%p315_p2), %v728_v24, %v727_v23  ;;  %v1471_v28 = vpack.c.bf16 (!%p315_p2), %v730_v27, %v729_v25  ;;  %v731_v29 = vld [vmem:[%s2015_s4 + $0x20] sm:$0xff] (!%p315_p2)  ;;  %v732_v30 = vld [vmem:[%s2015_s4 + $0x28] sm:$0xff] (!%p315_p2)  ;;  %v733_v32 = vld [vmem:[%s2015_s4 + $0x30] sm:$0xff] (!%p315_p2) }
   0xb   : > { %v1474_v31 = vpack.c.bf16 (!%p315_p2), %v732_v30, %v731_v29  ;;  %v734_v33 = vld [vmem:[%s2015_s4 + $0x38] sm:$0xff] (!%p315_p2)  ;;  %v735_v35 = vld [vmem:[%s2015_s4 + $0x40] sm:$0xff] (!%p315_p2)  ;;  %v736_v36 = vld [vmem:[%s2015_s4 + $0x48] sm:$0xff] (!%p315_p2) }
   0xc   : > { %1460 = vmatpush3.bf16.msra.mxu0 (!%p315_p2), %v1459_v12  ;;  %v1477_v34 = vpack.c.bf16 (!%p315_p2), %v734_v33, %v733_v32  ;;  %v1480_v37 = vpack.c.bf16 (!%p315_p2), %v736_v36, %v735_v35  ;;  %v737_v38 = vld [vmem:[%s2015_s4 + $0x50] sm:$0xff] (!%p315_p2)  ;;  %v738_v39 = vld [vmem:[%s2015_s4 + $0x58] sm:$0xff] (!%p315_p2)  ;;  %v739_v41 = vld [vmem:[%s2015_s4 + $0x60] sm:$0xff] (!%p315_p2) }
   0xd   : > { %s2023_s14 = smov (!%p356_p3, %s1255_s14), 1  ;;  %1466 = vmatpush3.bf16.msra.mxu1 %v1465_v13  ;;  %1374 = vmatprep.subr.mxu0 %v1592_v9  ;;  %v1483_v40 = vpack.c.bf16 %v738_v39, %v737_v38  ;;  %v740_v42 = vld [vmem:[%s2015_s4 + $0x68] sm:$0xff]  ;;  %v741_v44 = vld [vmem:[%s2015_s4 + $0x70] sm:$0xff]  ;;  %v742_v45 = vld [vmem:[%s2015_s4 + $0x78] sm:$0xff] }
   0xe   : > { %s1260_s11 = sshll.u32 %s2023_s14, 3  ;;  %1503 = vmatprep.subr.bf16.mxu1 %v1590_v3  ;;  %v1486_v43 = vpack.c.bf16 %v740_v42, %v739_v41  ;;  %v1489_v46 = vpack.c.bf16 %v742_v45, %v741_v44  ;;  %v743_v47 = vld [vmem:[%s2015_s4 + $0x80] sm:$0xff]  ;;  %v744_v48 = vld [vmem:[%s2015_s4 + $0x88] sm:$0xff]  ;;  %v745_v50 = vld [vmem:[%s2015_s4 + $0x90] sm:$0xff]  ;;  %s1282_s18 = sshll.u32 %s2023_s14, 4 }
   0xf   : > { %s359_s16 = scalar_lea.vmem %s2011_s0, %s1260_s11  ;;  %v1492_v49 = vpack.c.bf16 %v744_v48, %v743_v47  ;;  %v746_v51 = vld [vmem:[%s2015_s4 + $0x98] sm:$0xff]  ;;  %v747_v53 = vld [vmem:[%s2015_s4 + $0xa0] sm:$0xff]  ;;  %v748_v54 = vld [vmem:[%s2015_s4 + $0xa8] sm:$0xff]  ;;  %s364_s23 = scalar_lea.vmem %s2020_s9, %s1282_s18 }
  0x10   : > { %v370_v14 = vld [vmem:[%s359_s16] sm:$0xff]  ;;  %v1495_v52 = vpack.c.bf16 %v746_v51, %v745_v50  ;;  %v1498_v55 = vpack.c.bf16 %v748_v54, %v747_v53  ;;  %v749_v56 = vld [vmem:[%s2015_s4 + $0xb0] sm:$0xff]  ;;  %v750_v57 = vld [vmem:[%s2015_s4 + $0xb8] sm:$0xff]  ;;  %s369_s28 = scalar_lea.vmem %s2021_s10, %s1282_s18 }
  0x11   : > { %v545_v15 = vmax.f32 %v370_v14, 0.0  ;;  %1372 = vmatmul.mubr.msk.f32.vlgmr.msra.gmra.mrb[0].mxu0 %vm381_vm1, %v370_v14  ;;  %v1501_v58 = vpack.c.bf16 %v750_v57, %v749_v56  ;;  %v1273_v27 = vld [vmem:[%s2016_s5] ss:$0 sm:$0xff]  ;;  %v965_v35 = vld [vmem:[%s2017_s6 + $0x88] sm:$0xff]  ;;  %v966_v42 = vld [vmem:[%s2017_s6 + $0x90] sm:$0xff] }
  0x12   : > { %1376 = vmatprep.mubr.msk.f32.mxu0 %vm1591_vm0, %v1592_v9  ;;  %v948_v39 = vld [vmem:[%s2017_s6] sm:$0xff]  ;;  %v950_v47 = vld [vmem:[%s2017_s6 + $0x10] sm:$0xff]  ;;  %v951_v48 = vld [vmem:[%s2017_s6 + $0x18] sm:$0xff] }
  0x13   : > { %1394 = vmatmul.mubr.msk.f32.vlgmr.msra.gmra.mrb[0].mxu1 %vm381_vm1, %v545_v15  ;;  %v374_v44 = vld [vmem:[%s2013_s2] sm:$0xff]  ;;  %v969_v50 = vld [vmem:[%s2017_s6 + $0xa8] sm:$0xff]  ;;  %v970_v56 = vld [vmem:[%s2017_s6 + $0xb0] sm:$0xff] }
  0x14   : > { %1411 = vmatprep.mubr.msk.f32.mxu1 %vm1591_vm0, %v1592_v9  ;;  %v375_v51 = vld [vmem:[%s2013_s2 + $0x8] sm:$0xff]  ;;  %v952_v54 = vld [vmem:[%s2017_s6 + $0x20] sm:$0xff]  ;;  %v971_v57 = vld [vmem:[%s2017_s6 + $0xb8] sm:$0xff] }
  0xe4   : > { %v451_v17 = vpop.f32.mrb[0].mxu0 }
  0xe5   : > { %v1373_v18 = vpop.f32.mrb[1].mxu0  ;;  %1375 = vmatpush3.msra.mxu0 %v451_v17 }
  0xe6   : > { %v619_v19 = vpop.f32.mrb[0].mxu1  ;;  %1377 = vmatmul.mubr.msk.f32.vlgmr.msra.gmra.mrb[2].mxu0 %vm455_vm2, %v371_v16  ;;  %1396 = vmatprep.subr.mxu0 %v1592_v9 }
  0xe7   : > { %v1395_v20 = vpop.f32.mrb[1].mxu1  ;;  %1379 = vmatprep.mubr.msk.f32.mxu0 %vm1591_vm0, %v1592_v9  ;;  %1397 = vmatpush3.msra.mxu0 %v619_v19 }
  0xe8   : > { %1467 = vmatprep.subr.bf16.mxu0 %v1590_v3 }
  0xea   : > { %1380 = vmatmul.mubr.msk.f32.gmra.mrb[4].mxu0 %vm455_vm2, %v372_v21 }
  0xeb   : > { %1382 = vmatprep.mubr.msk.f32.mxu0 %vm1591_vm0, %v1592_v9 }
  0xee   : > { %1383 = vmatmul.mubr.msk.f32.gmra.mrb[6].mxu0 %vm455_vm2, %v373_v22 }
  0xef   : > { %1398 = vmatprep.mubr.msk.f32.mxu0 %vm1591_vm0, %v1592_v9 }
  0xf2   : > { %1399 = vmatmul.mubr.msk.f32.vlgmr.msra.gmra.mrb[8].mxu0 %vm455_vm2, %v371_v16 }
  0xf3   : > { %1401 = vmatprep.mubr.msk.f32.mxu0 %vm1591_vm0, %v1592_v9  ;;  %1469 = vmatpush1.bf16.msra.mxu0 %v1468_v26 }
  0xf4   : > { %1470 = vmatprep.subr.bf16.mxu0 %v1590_v3 }
  0xf6   : > { %1402 = vmatmul.mubr.msk.f32.gmra.mrb[10].mxu0 %vm455_vm2, %v372_v21 }
  0xf7   : > { %1404 = vmatprep.mubr.msk.f32.mxu0 %vm1591_vm0, %v1592_v9  ;;  %1472 = vmatpush1.bf16.msra.mxu0 %v1471_v28 }
  0xf8   : > { %1473 = vmatprep.subr.bf16.mxu0 %v1590_v3 }
  0xfa   : > { %1405 = vmatmul.mubr.msk.f32.gmra.mrb[12].mxu0 %vm455_vm2, %v373_v22 }
  0xfb   : > { %1475 = vmatpush1.bf16.msra.mxu0 %v1474_v31 }
  0xfc   : > { %1476 = vmatprep.subr.bf16.mxu0 %v1590_v3 }
  0xff   : > { %1478 = vmatpush1.bf16.msra.mxu0 %v1477_v34  ;;  %v964_v34 = vld [vmem:[%s2017_s6 + $0x80] sm:$0xff] }
 0x100   : > { %1479 = vmatprep.subr.bf16.mxu0 %v1590_v3  ;;  %v1506_v38 = vpack.c.bf16 %v965_v35, %v964_v34 }
 0x103   : > { %1481 = vmatpush1.bf16.msra.mxu0 %v1480_v37 }
 0x104   : > { %1482 = vmatprep.subr.bf16.mxu0 %v1590_v3 }
 0x107   : > { %1484 = vmatpush1.bf16.msra.mxu0 %v1483_v40  ;;  %v949_v40 = vld [vmem:[%s2017_s6 + $0x8] sm:$0xff] }
 0x108   : > { %1485 = vmatprep.subr.bf16.mxu0 %v1590_v3  ;;  %v1508_v45 = vpack.c.bf16 %v949_v40, %v948_v39 }
 0x10b   : > { %1487 = vmatpush1.bf16.msra.mxu0 %v1486_v43  ;;  %v967_v43 = vld [vmem:[%s2017_s6 + $0x98] sm:$0xff] }
 0x10c   : > { %1488 = vmatprep.subr.bf16.mxu0 %v1590_v3 }
 0x10f   : > { %1490 = vmatpush1.bf16.msra.mxu0 %v1489_v46  ;;  %v1510_v46 = vpack.c.bf16 %v967_v43, %v966_v42  ;;  %v984_v43 = vld [vmem:[%s2017_s6 + $0x120] sm:$0xff] }
 0x110   : > { %1491 = vmatprep.subr.bf16.mxu0 %v1590_v3 }
 0x113   : > { %1493 = vmatpush1.bf16.msra.mxu0 %v1492_v49  ;;  %v968_v49 = vld [vmem:[%s2017_s6 + $0xa0] sm:$0xff] }
 0x114   : > { %1494 = vmatprep.subr.bf16.mxu0 %v1590_v3  ;;  %v1514_v53 = vpack.c.bf16 %v969_v50, %v968_v49 }
 0x117   : > { %1496 = vmatpush1.bf16.msra.mxu0 %v1495_v52  ;;  %v1512_v52 = vpack.c.bf16 %v951_v48, %v950_v47 }
 0x118   : > { %1497 = vmatprep.subr.bf16.mxu0 %v1590_v3 }
 0x11b   : > { %1499 = vmatpush1.bf16.msra.mxu0 %v1498_v55  ;;  %v953_v55 = vld [vmem:[%s2017_s6 + $0x28] sm:$0xff] }
 0x11c   : > { %1500 = vmatprep.subr.bf16.mxu0 %v1590_v3 }
 0x11f   : > { %1502 = vmatpush1.bf16.msra.mxu0 %v1501_v58  ;;  %v376_v58 = vld [vmem:[%s2013_s2 + $0x10] sm:$0x3] }
 0x1b9   : > { %v531_v59 = vpop.f32.mrb[2].mxu0 }
 0x1ba   : > { %v1378_v60 = vpop.f32.mrb[3].mxu0  ;;  %v1156_v62 = vrot.slane %v531_v59, 1  ;;  %v1516_v59 = vpack.c.bf16 %v953_v55, %v952_v54  ;;  %v988_v54 = vld [vmem:[%s2017_s6 + $0x140] sm:$0xff]  ;;  %v989_v55 = vld [vmem:[%s2017_s6 + $0x148] sm:$0xff] }
 0x1bb   : > { %v1518_v60 = vpack.c.bf16 %v971_v57, %v970_v56  ;;  %v1554_v56 = vpack.c.bf16 %v989_v55, %v988_v54  ;;  %v990_v57 = vld [vmem:[%s2017_s6 + $0x150] sm:$0xff] }
 0x1bd   : > { %v536_v61 = vpop.f32.mrb[4].mxu0 }
 0x1be   : > { %v1157_v63 = vrot.slane %v536_v61, 1  ;;  %v1381_v0 = vpop.f32.mrb[5].mxu0  ;;  %v954_v61 = vld [vmem:[%s2017_s6 + $0x30] sm:$0xff] }
 0x1c0   : > { %v1812_v1 = vsel %vm706_vm3, %v1156_v62, %v1157_v63  ;;  %v955_v62 = vld [vmem:[%s2017_s6 + $0x38] sm:$0xff] }
 0x1c1   : > { %v541_v2 = vpop.f32.mrb[6].mxu0  ;;  %v1520_v0 = vpack.c.bf16 %v955_v62, %v954_v61  ;;  %v993_v61 = vld [vmem:[%s2017_s6 + $0x168] sm:$0xff] }
 0x1c2   : > { %v1159_v4 = vrot.slane %v541_v2, 1  ;;  %v1384_v5 = vpop.f32.mrb[7].mxu0 }
 0x1c3   : > { %v957_v5 = vld [vmem:[%s2017_s6 + $0x48] sm:$0xff] }
 0x1c4   : > { %v1815_v6 = vsel %vm706_vm3, %v1157_v63, %v1159_v4  ;;  %v973_v63 = vld [vmem:[%s2017_s6 + $0xc8] sm:$0xff]  ;;  %v956_v4 = vld [vmem:[%s2017_s6 + $0x40] sm:$0xff] }
 0x1c5   : > { %v689_v7 = vpop.f32.mrb[8].mxu0 }
 0x1c6   : > { %v1400_v8 = vpop.f32.mrb[9].mxu0  ;;  %v707_v10 = vrot.slane %v689_v7, 1  ;;  %v719_v11 = vrot.slane %v689_v7, 2 }
 0x1c7   : > { %v975_v8 = vld [vmem:[%s2017_s6 + $0xd8] sm:$0xff] }
 0x1c9   : > { %v694_v3 = vpop.f32.mrb[10].mxu0 }
 0x1ca   : > { %v708_v12 = vrot.slane %v694_v3, 1  ;;  %v720_v13 = vrot.slane %v694_v3, 2  ;;  %v1403_v14 = vpop.f32.mrb[11].mxu0 }
 0x1cb   : > { %v977_v14 = vld [vmem:[%s2017_s6 + $0xe8] sm:$0xff] }
 0x1cc   : > { %v721_v15 = vsel %vm718_vm4, %v719_v11, %v720_v13  ;;  %v709_v16 = vsel %vm706_vm3, %v707_v10, %v708_v12  ;;  %v958_v11 = vld [vmem:[%s2017_s6 + $0x50] sm:$0xff] }
 0x1cd   : > { %1274 = vmatprep.mubr.msk.f32.mxu0 %vm724_vm5, %v721_v15  ;;  %712 = vrot.lane.b32.xlu0 %v709_v16, %s1593_s17  ;;  %v699_v17 = vpop.f32.mrb[12].mxu0 }
 0x1ce   : > { %v710_v18 = vrot.slane %v699_v17, 1  ;;  %v722_v19 = vrot.slane %v699_v17, 2  ;;  %v1406_v20 = vpop.f32.mrb[13].mxu0  ;;  %v960_v17 = vld [vmem:[%s2017_s6 + $0x60] sm:$0xff] }
 0x1cf   : > { %v978_v20 = vld [vmem:[%s2017_s6 + $0xf0] sm:$0xff] }
 0x1d0   : > { %v711_v21 = vsel %vm706_vm3, %v708_v12, %v710_v18  ;;  %v723_v22 = vsel %vm718_vm4, %v720_v13, %v722_v19  ;;  %v959_v12 = vld [vmem:[%s2017_s6 + $0x58] sm:$0xff]  ;;  %v976_v13 = vld [vmem:[%s2017_s6 + $0xe0] sm:$0xff]  ;;  %v961_v18 = vld [vmem:[%s2017_s6 + $0x68] sm:$0xff] }
 0x1d1   : > { %714 = vrot.lane.b32.xlu0 %v711_v21, %s1593_s17  ;;  %v1528_v15 = vpack.c.bf16 %v959_v12, %v958_v11  ;;  %v1530_v16 = vpack.c.bf16 %v977_v14, %v976_v13  ;;  %v1532_v19 = vpack.c.bf16 %v961_v18, %v960_v17  ;;  %v979_v21 = vld [vmem:[%s2017_s6 + $0xf8] sm:$0xff] }
 0x23f   : > { %v713_v23 = vpop.permute.xlu0 %712 }
 0x240   : > { %v725_v24 = vsel %vm724_vm5, %v689_v7, %v713_v23  ;;  %v974_v7 = vld [vmem:[%s2017_s6 + $0xd0] sm:$0xff] }
 0x241   : > { %827 = vmatmul.mubr.f32.vlgmr.msra.gmra.mrb[14].mxu0 %v725_v24  ;;  %v1526_v10 = vpack.c.bf16 %v975_v8, %v974_v7  ;;  %v962_v23 = vld [vmem:[%s2017_s6 + $0x70] sm:$0xff]  ;;  %v963_v24 = vld [vmem:[%s2017_s6 + $0x78] sm:$0xff] }
 0x242   : > { %1275 = vmatprep.mubr.msk.f32.mxu0 %vm724_vm5, %v723_v22  ;;  %v1534_v22 = vpack.c.bf16 %v979_v21, %v978_v20 }
 0x243   : > { %v715_v25 = vpop.permute.xlu0 %714 }
 0x244   : > { %v726_v26 = vsel %vm724_vm5, %v694_v3, %v715_v25  ;;  %v1524_v3 = vpack.c.bf16 %v957_v5, %v956_v4  ;;  %v1536_v25 = vpack.c.bf16 %v963_v24, %v962_v23 }
 0x245   : > { %832 = vmatmul.mubr.f32.gmra.mrb[16].mxu0 %v726_v26  ;;  %v980_v26 = vld [vmem:[%s2017_s6 + $0x100] sm:$0xff] }
 0x314   : > { %v828_v28 = vpop.f32.mrb[14].mxu0 }
 0x315   : > { %v829_v29 = vadd.f32 %v1273_v27, %v828_v28  ;;  %v830_v30 = vpop.f32.mrb[15].mxu0 }
 0x317   : > { %837 = vst [vmem:[%s364_s23] sm:$0xff] %v829_v29  ;;  %v839_v36 = vmax.f32 %v829_v29, 0.0 }
 0x318   : > { %v833_v31 = vpop.f32.mrb[16].mxu0 }
 0x319   : > { %v834_v32 = vadd.f32 %v1273_v27, %v833_v31  ;;  %v835_v33 = vpop.f32.mrb[17].mxu0  ;;  %v981_v27 = vld [vmem:[%s2017_s6 + $0x108] sm:$0xff] }
 0x31a   : > { %v1538_v28 = vpack.c.bf16 %v981_v27, %v980_v26  ;;  %v983_v33 = vld [vmem:[%s2017_s6 + $0x118] sm:$0xff] }
 0x31b   : > { %838 = vst [vmem:[%s364_s23 + $0x8] sm:$0xff] %v834_v32  ;;  %v840_v37 = vmax.f32 %v834_v32, 0.0  ;;  %v982_v32 = vld [vmem:[%s2017_s6 + $0x110] sm:$0xff] }
 0x31c   : > { %v1542_v40 = vpack.c.bf16 %v983_v33, %v982_v32 }
 0x31d   : > { %v1504_v41 = vpack.c.bf16 %v840_v37, %v839_v36 }
 0x31f   : > { %1505 = vmatpush3.bf16.msra.mxu1 %v1504_v41 }
 0x320   : > { %1507 = vmatprep.subr.bf16.mxu1 %v1506_v38 }
 0x322   : > { %1412 = vmatmul.mubr.msk.f32.vlgmr.msra.gmra.mrb[2].mxu1 %vm841_vm6, %v374_v44  ;;  %v985_v44 = vld [vmem:[%s2017_s6 + $0x128] sm:$0xff] }
 0x323   : > { %1414 = vmatprep.mubr.msk.f32.mxu1 %vm1591_vm0, %v1592_v9  ;;  %1509 = vmatpush3.bf16.msra.mxu1 %v1508_v45  ;;  %v1546_v49 = vpack.c.bf16 %v985_v44, %v984_v43 }
 0x324   : > { %1511 = vmatprep.subr.bf16.mxu1 %v1510_v46 }
 0x326   : > { %1415 = vmatmul.mubr.msk.f32.gmra.mrb[4].mxu1 %vm841_vm6, %v375_v51  ;;  %v986_v51 = vld [vmem:[%s2017_s6 + $0x130] sm:$0xff] }
 0x327   : > { %1417 = vmatprep.mubr.msk.f32.mxu1 %vm1591_vm0, %v1592_v9  ;;  %1513 = vmatpush3.bf16.msra.mxu1 %v1512_v52  ;;  %v972_v9 = vld [vmem:[%s2017_s6 + $0xc0] sm:$0xff]  ;;  %v987_v52 = vld [vmem:[%s2017_s6 + $0x138] sm:$0xff] }
 0x328   : > { %1515 = vmatprep.subr.bf16.mxu1 %v1514_v53  ;;  %v1522_v2 = vpack.c.bf16 %v973_v63, %v972_v9  ;;  %v1550_v53 = vpack.c.bf16 %v987_v52, %v986_v51  ;;  %v994_v9 = vld [vmem:[%s2017_s6 + $0x170] sm:$0xff]  ;;  %v995_v63 = vld [vmem:[%s2017_s6 + $0x178] sm:$0xff] }
 0x32a   : > { %1418 = vmatmul.mubr.msk.f32.gmra.mrb[6].mxu1 %vm841_vm6, %v376_v58  ;;  %v991_v58 = vld [vmem:[%s2017_s6 + $0x158] sm:$0xff] }
 0x32b   : > { %1517 = vmatpush3.bf16.msra.mxu1 %v1516_v59  ;;  %v1558_v59 = vpack.c.bf16 %v991_v58, %v990_v57 }
 0x32c   : > { %1519 = vmatprep.subr.bf16.mxu1 %v1518_v60  ;;  %v992_v60 = vld [vmem:[%s2017_s6 + $0x160] sm:$0xff] }
 0x32d   : > { %v1562_v62 = vpack.c.bf16 %v993_v61, %v992_v60 }
 0x32f   : > { %1521 = vmatpush3.bf16.msra.mxu1 %v1520_v0  ;;  %v1566_v0 = vpack.c.bf16 %v995_v63, %v994_v9 }
 0x330   : > { %1523 = vmatprep.subr.bf16.mxu1 %v1522_v2 }
 0x333   : > { %1525 = vmatpush3.bf16.msra.mxu1 %v1524_v3 }
 0x334   : > { %1527 = vmatprep.subr.bf16.mxu1 %v1526_v10  ;;  %v1279_v10 = vld [vmem:[%s2018_s7] ss:$0 sm:$0xff] }
 0x337   : > { %1529 = vmatpush3.bf16.msra.mxu1 %v1528_v15 }
 0x338   : > { %1531 = vmatprep.subr.bf16.mxu1 %v1530_v16 }
 0x33b   : > { %1533 = vmatpush3.bf16.msra.mxu1 %v1532_v19 }
 0x33c   : > { %1535 = vmatprep.subr.bf16.mxu1 %v1534_v22 }
 0x33f   : > { %1537 = vmatpush3.bf16.msra.mxu1 %v1536_v25 }
 0x340   : > { %1539 = vmatprep.subr.bf16.mxu1 %v1538_v28 }
 0x3f5   : > { %v917_v29 = vpop.f32.mrb[2].mxu1 }
 0x3f6   : > { %v1413_v30 = vpop.f32.mrb[3].mxu1  ;;  %v934_v34 = vrot.slane %v917_v29, 1  ;;  %v941_v35 = vrot.slane %v917_v29, 2 }
 0x3f9   : > { %v922_v31 = vpop.f32.mrb[4].mxu1 }
 0x3fa   : > { %v935_v36 = vrot.slane %v922_v31, 1  ;;  %v942_v37 = vrot.slane %v922_v31, 2  ;;  %v1416_v38 = vpop.f32.mrb[5].mxu1 }
 0x3fc   : > { %v936_v39 = vsel %vm706_vm3, %v934_v34, %v935_v36  ;;  %v943_v41 = vsel %vm718_vm4, %v941_v35, %v942_v37 }
 0x3fd   : > { %v927_v42 = vpop.f32.mrb[6].mxu1  ;;  %1067 = vmatprep.mubr.f32.mxu1 %v936_v39 }
 0x3fe   : > { %v937_v45 = vrot.slane %v927_v42, 1  ;;  %v944_v46 = vrot.slane %v927_v42, 2  ;;  %1068 = vmatmul.mubr.f32.vlgmr.msra.gmra.mrb[8].mxu1 %v917_v29  ;;  %v1419_v47 = vpop.f32.mrb[7].mxu1 }
 0x3ff   : > { %1541 = vmatpush3.bf16.msra.mxu1 %v1538_v28 }
 0x400   : > { %v938_v48 = vsel %vm706_vm3, %v935_v36, %v937_v45  ;;  %1543 = vmatprep.subr.bf16.mxu1 %v1542_v40  ;;  %v945_v50 = vsel %vm718_vm4, %v942_v37, %v944_v46 }
 0x401   : > { %1072 = vmatprep.mubr.f32.mxu1 %v938_v48 }
 0x402   : > { %1073 = vmatmul.mubr.f32.gmra.mrb[10].mxu1 %v922_v31 }
 0x403   : > { %1545 = vmatpush3.bf16.msra.mxu1 %v1542_v40  ;;  %1452 = vmatprep.mubr.f32.mxu1 %v943_v41 }
 0x404   : > { %1547 = vmatprep.subr.bf16.mxu1 %v1546_v49 }
 0x407   : > { %1549 = vmatpush3.bf16.msra.mxu1 %v1546_v49 }
 0x408   : > { %1551 = vmatprep.subr.bf16.mxu1 %v1550_v53 }
 0x40b   : > { %1553 = vmatpush3.bf16.msra.mxu1 %v1550_v53 }
 0x40c   : > { %1555 = vmatprep.subr.bf16.mxu1 %v1554_v56 }
 0x40f   : > { %1557 = vmatpush3.bf16.msra.mxu1 %v1554_v56 }
 0x410   : > { %1559 = vmatprep.subr.bf16.mxu1 %v1558_v59 }
 0x413   : > { %1561 = vmatpush3.bf16.msra.mxu1 %v1558_v59 }
 0x414   : > { %1563 = vmatprep.subr.bf16.mxu1 %v1562_v62 }
 0x417   : > { %1565 = vmatpush3.bf16.msra.mxu1 %v1562_v62 }
 0x418   : > { %1567 = vmatprep.subr.bf16.mxu1 %v1566_v0 }
 0x41b   : > { %1569 = vmatpush3.bf16.msra.mxu1 %v1566_v0 }
 0x41e   : > { %1453 = vmatmul.mubr.f32.vlgmr.msra.gmra.mrb[12].mxu1 %v945_v50 }
 0x4d1   : > { %v1339_v2 = vpop.f32.mrb[8].mxu1 }
 0x4d2   : > { %v1340_v4 = vpop.f32.mrb[9].mxu1 }
 0x4d3   : > { %v1341_v5 = vadd.f32 %v1340_v4, %v1339_v2 }
 0x4d5   : > { %v1342_v7 = vpop.f32.mrb[10].mxu1  ;;  %v1070_v13 = vadd.f32 %v1341_v5, %v1279_v10 }
 0x4d6   : > { %v1343_v8 = vpop.f32.mrb[11].mxu1 }
 0x4d7   : > { %v1344_v3 = vadd.f32 %v1343_v8, %v1342_v7 }
 0x4d9   : > { %v1075_v11 = vadd.f32 %v1344_v3, %v1279_v10 }
 0x4f1   : > { %v1454_v12 = vpop.f32.mrb[12].mxu1 }
 0x4f2   : > { %v1150_v14 = vadd.f32 %v1454_v12, %v1075_v11  ;;  %v1144_v15 = vpop.f32.mrb[13].mxu1 }
 0x4f3   : > { %v1145_v16 = vadd.f32 %v1144_v15, %v1070_v13 }
 0x4f4   : > { %v1164_v17 = vadd.f32 %v1815_v6, %v1150_v14 }
 0x4f5   : > { %v1163_v18 = vadd.f32 %v1812_v1, %v1145_v16 }
 0x4f6   : > { %1166 = vst [vmem:[%s369_s28 + $0x8] sm:$0xff] %v1164_v17 }
 0x4f7   : > { %1165 = vst [vmem:[%s369_s28] sm:$0xff] %v1163_v18 }
 0x4f8 PF: > { %s21_s13 = sadd.s32 1, %s1588_s13  }
 0x4f9   : > { %p18_p4 = scmp.ge.s32.totalorder %s21_s13, 4  }
 0x4fb   :  { %20 = sbr.rel (!%p18_p4) target bundleno = 1 (0x1), region = 98 }

</bundles_post_ra>
